<compile_context>
chip_gen: v5e
topology: v5e:2x2
jax: 0.10.0
libtpu: 0.0.40
codegen_flags: <defaults>
</compile_context>

<pallas_src>
import math
import functools

import jax
import jax.numpy as jnp
from jax import lax
from jax.experimental import pallas as pl
from jax.experimental.pallas import tpu as pltpu


# -------------------- helpers --------------------

@functools.lru_cache(maxsize=None)
def _vmem_limit_bytes():
    # Generation-aware scoped-VMEM limit (v7x has only 64 MiB physical VMEM).
    try:
        cap = int(pltpu.get_tpu_info().vmem_capacity_bytes)
        return int(min(cap // 2, 64 * 1024 * 1024))
    except Exception:
        return 32 * 1024 * 1024


def _cparams(*sems):
    return pltpu.CompilerParams(
        dimension_semantics=tuple(sems) if sems else None,
        vmem_limit_bytes=_vmem_limit_bytes(),
    )


def _row_grid(M, cap=512):
    """Row tile + grid size; cdiv-style (padded last tile) when M > cap."""
    if M <= cap:
        return M, 1
    return cap, pl.cdiv(M, cap)


def _time_tile(T):
    """Time steps per GRU grid iteration (multiple of 8 unless it is all of T)."""
    if T <= 32:
        return T
    for u in (32, 24, 16, 8):
        if T % u == 0:
            return u
    return T


# -------------------- generic fused linear kernels --------------------

def _linear_kernel(x_ref, w_ref, b_ref, o_ref, *, act):
    y = jnp.dot(x_ref[...], w_ref[...], preferred_element_type=jnp.float32) + b_ref[...]
    if act == "relu":
        y = jnp.maximum(y, 0.0)
    o_ref[...] = y


def linear(x, w, b, act="none"):
    """x: (M, K), w: (K, N) pre-transposed, b: (1, N) -> (M, N)."""
    M, K = x.shape
    N = w.shape[1]
    tm, nb = _row_grid(M)
    # TODO(synk): add an N-axis grid tile for very large FF weights on v7x.
    return pl.pallas_call(
        functools.partial(_linear_kernel, act=act),
        grid=(nb,),
        in_specs=[pl.BlockSpec((tm, K), lambda i: (i, 0)),
                  pl.BlockSpec((K, N), lambda i: (0, 0)),
                  pl.BlockSpec((1, N), lambda i: (0, 0))],
        out_specs=pl.BlockSpec((tm, N), lambda i: (i, 0)),
        out_shape=jax.ShapeDtypeStruct((M, N), jnp.float32),
        compiler_params=_cparams("parallel"),
    )(x, w, b)


def _linear_res_ln_kernel(x_ref, w_ref, b_ref, r_ref, g_ref, beta_ref, o_ref):
    y = jnp.dot(x_ref[...], w_ref[...], preferred_element_type=jnp.float32)
    y = y + b_ref[...] + r_ref[...]                 # bias + residual
    mean = jnp.mean(y, axis=-1, keepdims=True)
    yc = y - mean
    var = jnp.mean(yc * yc, axis=-1, keepdims=True)
    o_ref[...] = yc * lax.rsqrt(var + 1e-5) * g_ref[...] + beta_ref[...]


def linear_res_ln(x, w, b, res, g, beta):
    """Fused (x @ w + b + res) -> LayerNorm, row-tiled."""
    M, K = x.shape
    N = w.shape[1]
    tm, nb = _row_grid(M)
    return pl.pallas_call(
        _linear_res_ln_kernel,
        grid=(nb,),
        in_specs=[pl.BlockSpec((tm, K), lambda i: (i, 0)),
                  pl.BlockSpec((K, N), lambda i: (0, 0)),
                  pl.BlockSpec((1, N), lambda i: (0, 0)),
                  pl.BlockSpec((tm, N), lambda i: (i, 0)),
                  pl.BlockSpec((1, N), lambda i: (0, 0)),
                  pl.BlockSpec((1, N), lambda i: (0, 0))],
        out_specs=pl.BlockSpec((tm, N), lambda i: (i, 0)),
        out_shape=jax.ShapeDtypeStruct((M, N), jnp.float32),
        compiler_params=_cparams("parallel"),
    )(x, w, b, res, g, beta)


# ---------- fused attention block: QKV proj + MHA + out-proj + residual + LN1 ----------

def _mha_block_kernel(x_ref, wqkv_ref, bqkv_ref, bias_ref, wout_ref, bout_ref,
                      g_ref, beta_ref, o_ref, attn_sc, *, nhead, E, scale):
    x = x_ref[0]                                       # (T, E)
    qkv = jnp.dot(x, wqkv_ref[...], preferred_element_type=jnp.float32) + bqkv_ref[...]
    q = qkv[:, :E]
    k = qkv[:, E:2 * E]
    v = qkv[:, 2 * E:3 * E]
    bias = bias_ref[0]                                 # (1, T) key-padding bias
    Dh = E // nhead
    for h in range(nhead):                             # static, small head loop
        lo = h * Dh
        qh = q[:, lo:lo + Dh]
        kh = k[:, lo:lo + Dh]
        vh = v[:, lo:lo + Dh]
        s = lax.dot_general(qh, kh, (((1,), (1,)), ((), ())),
                            preferred_element_type=jnp.float32) * scale + bias
        m = jnp.max(s, axis=-1, keepdims=True)
        p = jnp.exp(s - m)
        p = p * pl.reciprocal(jnp.sum(p, axis=-1, keepdims=True), approx=True)
        # write this head's output directly (bounds live ranges, no concat)
        attn_sc[:, lo:lo + Dh] = jnp.dot(p, vh, preferred_element_type=jnp.float32)
    # out-projection + residual + LayerNorm1 fused in the same kernel
    y = jnp.dot(attn_sc[...], wout_ref[...], preferred_element_type=jnp.float32)
    y = y + bout_ref[...] + x
    mean = jnp.mean(y, axis=-1, keepdims=True)
    yc = y - mean
    var = jnp.mean(yc * yc, axis=-1, keepdims=True)
    o_ref[0] = yc * lax.rsqrt(var + 1e-5) * g_ref[...] + beta_ref[...]


def mha_block(x, p, bias3, nhead):
    # TODO(synk): add kv-block (flash-style) tiling for long sequences on v7x.
    B, T, E = x.shape
    return pl.pallas_call(
        functools.partial(_mha_block_kernel, nhead=nhead, E=E,
                          scale=1.0 / math.sqrt(E // nhead)),
        grid=(B,),
        in_specs=[pl.BlockSpec((1, T, E), lambda b: (b, 0, 0)),
                  pl.BlockSpec((E, 3 * E), lambda b: (0, 0)),
                  pl.BlockSpec((1, 3 * E), lambda b: (0, 0)),
                  pl.BlockSpec((1, 1, T), lambda b: (b, 0, 0)),
                  pl.BlockSpec((E, E), lambda b: (0, 0)),
                  pl.BlockSpec((1, E), lambda b: (0, 0)),
                  pl.BlockSpec((1, E), lambda b: (0, 0)),
                  pl.BlockSpec((1, E), lambda b: (0, 0))],
        out_specs=pl.BlockSpec((1, T, E), lambda b: (b, 0, 0)),
        out_shape=jax.ShapeDtypeStruct((B, T, E), jnp.float32),
        scratch_shapes=[pltpu.VMEM((T, E), jnp.float32)],
        compiler_params=_cparams("parallel"),
    )(x, p["in_w"], p["in_b"], bias3, p["out_w"], p["out_b"], p["ln1_g"], p["ln1_b"])


def encoder_layer(x, p, bias3, nhead):
    """PyTorch TransformerEncoderLayer (post-norm, relu, batch_first)."""
    B, T, E = x.shape
    x1 = mha_block(x, p, bias3, nhead).reshape(B * T, E)        # attn + out-proj + res + LN1
    h = linear(x1, p["ff1_w"], p["ff1_b"], act="relu")
    x2 = linear_res_ln(h, p["ff2_w"], p["ff2_b"], x1,           # ff2 + residual + LN2
                       p["ln2_g"], p["ln2_b"])
    return x2.reshape(B, T, E)


# -------------------- CNN branch: Conv1d + ReLU + AdaptiveMaxPool1d(1) --------------------

def _conv_pool_kernel(x_ref, w_ref, b_ref, o_ref, *, K):
    x = x_ref[0]                                           # (T, E)
    T, E = x.shape
    L = T - K + 1                                          # assumes T >= K
    # im2col: single (L, K*E) @ (K*E, F) matmul instead of K small matmuls
    cols = jnp.concatenate([x[dk:dk + L, :] for dk in range(K)], axis=-1)
    y = jnp.dot(cols, w_ref[...], preferred_element_type=jnp.float32) + b_ref[...]
    y = jnp.maximum(y, 0.0)
    o_ref[0] = jnp.max(y, axis=0, keepdims=True)           # AdaptiveMaxPool1d(1)


def conv_relu_maxpool(x, w2, b):
    """x: (B, T, E); w2: (K*E, F) pre-reshaped im2col weight; b: (1, F) -> (B, F)."""
    B, T, E = x.shape
    KE, F_ = w2.shape
    K = KE // E
    out = pl.pallas_call(
        functools.partial(_conv_pool_kernel, K=K),
        grid=(B,),
        in_specs=[pl.BlockSpec((1, T, E), lambda i: (i, 0, 0)),
                  pl.BlockSpec((KE, F_), lambda i: (0, 0)),
                  pl.BlockSpec((1, F_), lambda i: (0, 0))],
        out_specs=pl.BlockSpec((1, 1, F_), lambda i: (i, 0, 0)),
        out_shape=jax.ShapeDtypeStruct((B, 1, F_), jnp.float32),
        compiler_params=_cparams("parallel"),
    )(x, w2, b)
    return out.reshape(B, F_)


# -------------------- GRU input projection (fwd + bwd streams, one x read) --------------------

def _dual_linear_kernel(x_ref, wf_ref, bf_ref, wb_ref, bb_ref, of_ref, ob_ref):
    x = x_ref[...]
    of_ref[...] = jnp.dot(x, wf_ref[...], preferred_element_type=jnp.float32) + bf_ref[...]
    ob_ref[...] = jnp.dot(x, wb_ref[...], preferred_element_type=jnp.float32) + bb_ref[...]


def gru_input_proj(x, wf, bf, wb, bb):
    M, K = x.shape
    N = wf.shape[1]
    tm, nb = _row_grid(M)
    return pl.pallas_call(
        _dual_linear_kernel,
        grid=(nb,),
        in_specs=[pl.BlockSpec((tm, K), lambda i: (i, 0)),
                  pl.BlockSpec((K, N), lambda i: (0, 0)),
                  pl.BlockSpec((1, N), lambda i: (0, 0)),
                  pl.BlockSpec((K, N), lambda i: (0, 0)),
                  pl.BlockSpec((1, N), lambda i: (0, 0))],
        out_specs=[pl.BlockSpec((tm, N), lambda i: (i, 0)),
                   pl.BlockSpec((tm, N), lambda i: (i, 0))],
        out_shape=(jax.ShapeDtypeStruct((M, N), jnp.float32),
                   jax.ShapeDtypeStruct((M, N), jnp.float32)),
        compiler_params=_cparams("parallel"),
    )(x, wf, bf, wb, bb)


# -------------------- fused bidirectional GRU (U time steps per grid step) --------------------

def _bigru_kernel(xf_ref, xb_ref, whf_ref, whb_ref, bhf_ref, bhb_ref,
                  of_ref, ob_ref, hf_sc, hb_sc, *, H, U):
    @pl.when(pl.program_id(1) == 0)
    def _():
        hf_sc[...] = jnp.zeros_like(hf_sc)
        hb_sc[...] = jnp.zeros_like(hb_sc)

    # W_hh / b_hh loaded once per grid step, reused across the U unrolled steps
    whf = whf_ref[...]
    whb = whb_ref[...]
    bhf = bhf_ref[...]
    bhb = bhb_ref[...]

    def gru_step(xg, h, wh, bh):
        # single (B,H) @ (H,3H) recurrent matmul, gates [r|z|n] (PyTorch order)
        hg = jnp.dot(h, wh, preferred_element_type=jnp.float32) + bh
        r = jax.nn.sigmoid(xg[:, :H] + hg[:, :H])
        z = jax.nn.sigmoid(xg[:, H:2 * H] + hg[:, H:2 * H])
        n = jnp.tanh(xg[:, 2 * H:3 * H] + r * hg[:, 2 * H:3 * H])
        return (1.0 - z) * n + z * h

    hf = hf_sc[...]
    hb = hb_sc[...]
    for u in range(U):                                 # static unrolled time loop
        hf = gru_step(xf_ref[:, u, :], hf, whf, bhf)           # forward, time t0+u
        hb = gru_step(xb_ref[:, U - 1 - u, :], hb, whb, bhb)   # backward, reversed
        of_ref[:, u, :] = hf
        ob_ref[:, U - 1 - u, :] = hb
    hf_sc[...] = hf
    hb_sc[...] = hb


def bigru(xg_f, xg_b, whf, whb, bhf, bhb, H):
    """xg_f/xg_b: (B, T, 3H) precomputed input-gate projections (fwd / bwd).
    Returns hf, hb of shape (B, T, H); hb is aligned to original time indices."""
    B, T, _ = xg_f.shape
    U = _time_tile(T)
    nTb = T // U
    NB = 2 if (B % 2 == 0 and B >= 2) else 1           # batch split across cores (v7x)
    Bblk = B // NB
    hf, hb = pl.pallas_call(
        functools.partial(_bigru_kernel, H=H, U=U),
        grid=(NB, nTb),
        in_specs=[pl.BlockSpec((Bblk, U, 3 * H), lambda bi, t: (bi, t, 0)),
                  pl.BlockSpec((Bblk, U, 3 * H), lambda bi, t: (bi, nTb - 1 - t, 0)),
                  pl.BlockSpec((H, 3 * H), lambda bi, t: (0, 0)),
                  pl.BlockSpec((H, 3 * H), lambda bi, t: (0, 0)),
                  pl.BlockSpec((1, 3 * H), lambda bi, t: (0, 0)),
                  pl.BlockSpec((1, 3 * H), lambda bi, t: (0, 0))],
        out_specs=[pl.BlockSpec((Bblk, U, H), lambda bi, t: (bi, t, 0)),
                   pl.BlockSpec((Bblk, U, H), lambda bi, t: (bi, nTb - 1 - t, 0))],
        out_shape=(jax.ShapeDtypeStruct((B, T, H), jnp.float32),
                   jax.ShapeDtypeStruct((B, T, H), jnp.float32)),
        scratch_shapes=[pltpu.VMEM((Bblk, H), jnp.float32),
                        pltpu.VMEM((Bblk, H), jnp.float32)],
        compiler_params=_cparams("parallel", "arbitrary"),
    )(xg_f, xg_b, whf, whb, bhf, bhb)
    return hf, hb


# -------------------- fused gru_norm + additive attention pooling --------------------

def _norm_attn_pool_kernel(hf_ref, hb_ref, g_ref, b_ref, wa_ref, ba_ref, v_ref,
                           bias_ref, o_ref):
    # combine fwd/bwd GRU halves on-chip (no HBM concat / transpose)
    x = jnp.concatenate([hf_ref[0], hb_ref[0]], axis=-1)   # (T, 2H)
    mean = jnp.mean(x, axis=-1, keepdims=True)              # LayerNorm(gru_output)
    xc = x - mean
    var = jnp.mean(xc * xc, axis=-1, keepdims=True)
    xn = xc * lax.rsqrt(var + 1e-5) * g_ref[...] + b_ref[...]
    mu = jnp.tanh(jnp.dot(xn, wa_ref[...], preferred_element_type=jnp.float32) + ba_ref[...])
    s = jnp.dot(mu, v_ref[...], preferred_element_type=jnp.float32) + bias_ref[0]   # (T, 1)
    m = jnp.max(s, axis=0, keepdims=True)
    p = jnp.exp(s - m)
    alpha = p * pl.reciprocal(jnp.sum(p, axis=0, keepdims=True), approx=True)
    # context = sum_t alpha_t * xn_t as a matmul (MXU) instead of bcast-mul + reduce
    o_ref[0] = lax.dot_general(alpha, xn, (((0,), (0,)), ((), ())),
                               preferred_element_type=jnp.float32)


def norm_attn_pool(hf, hb, g, b, wa, ba, vw, biasT):
    B, T, H = hf.shape
    D2 = 2 * H
    out = pl.pallas_call(
        _norm_attn_pool_kernel,
        grid=(B,),
        in_specs=[pl.BlockSpec((1, T, H), lambda i: (i, 0, 0)),
                  pl.BlockSpec((1, T, H), lambda i: (i, 0, 0)),
                  pl.BlockSpec((1, D2), lambda i: (0, 0)),
                  pl.BlockSpec((1, D2), lambda i: (0, 0)),
                  pl.BlockSpec((D2, D2), lambda i: (0, 0)),
                  pl.BlockSpec((1, D2), lambda i: (0, 0)),
                  pl.BlockSpec((D2, 1), lambda i: (0, 0)),
                  pl.BlockSpec((1, T, 1), lambda i: (i, 0, 0))],
        out_specs=pl.BlockSpec((1, 1, D2), lambda i: (i, 0, 0)),
        out_shape=jax.ShapeDtypeStruct((B, 1, D2), jnp.float32),
        compiler_params=_cparams("parallel"),
    )(hf, hb, g, b, wa, ba, vw, biasT)
    return out.reshape(B, D2)


# -------------------- fused final MLP head (split fc1, no lane concat) --------------------

def _mlp_head_kernel(c_ref, a_ref, w1c_ref, w1a_ref, b1_ref, w2_ref, b2_ref, o_ref):
    h = jnp.dot(c_ref[...], w1c_ref[...], preferred_element_type=jnp.float32)
    h = h + jnp.dot(a_ref[...], w1a_ref[...], preferred_element_type=jnp.float32) + b1_ref[...]
    h = jnp.maximum(h, 0.0)
    o_ref[...] = jnp.dot(h, w2_ref[...], preferred_element_type=jnp.float32) + b2_ref[...]


def mlp_head(cnn_out, ctx, w1c, w1a, b1, w2, b2):
    B, F_ = cnn_out.shape
    D2 = ctx.shape[1]
    dense = w1c.shape[1]
    return pl.pallas_call(
        _mlp_head_kernel,
        grid=(1,),
        in_specs=[pl.BlockSpec((B, F_), lambda i: (0, 0)),
                  pl.BlockSpec((B, D2), lambda i: (0, 0)),
                  pl.BlockSpec((F_, dense), lambda i: (0, 0)),
                  pl.BlockSpec((D2, dense), lambda i: (0, 0)),
                  pl.BlockSpec((1, dense), lambda i: (0, 0)),
                  pl.BlockSpec((dense, 1), lambda i: (0, 0)),
                  pl.BlockSpec((1, 1), lambda i: (0, 0))],
        out_specs=pl.BlockSpec((B, 1), lambda i: (0, 0)),
        out_shape=jax.ShapeDtypeStruct((B, 1), jnp.float32),
        compiler_params=_cparams("arbitrary"),
    )(cnn_out, ctx, w1c, w1a, b1, w2, b2)


# -------------------- glue: positional encoding / forward --------------------

def _positional_encoding(T, E):
    # assumes E is even (as in the PyTorch module's interleaved sin/cos)
    pos = jnp.arange(T, dtype=jnp.float32)[:, None]
    div = jnp.exp(jnp.arange(0, E, 2, dtype=jnp.float32) * (-math.log(10000.0) / E))
    pe = jnp.zeros((T, E), jnp.float32)
    pe = pe.at[:, 0::2].set(jnp.sin(pos * div))
    pe = pe.at[:, 1::2].set(jnp.cos(pos * div))
    return pe


def forward(text, params, cfg):
    B, T = text.shape
    E, nhead, H = cfg["embedding_dim"], cfg["nhead"], cfg["gru_units"]
    pad_mask = (text == 0)                                     # padding_idx == 0
    bias = jnp.where(pad_mask, -1e9, 0.0).astype(jnp.float32)  # finite stand-in for -inf
    bias3 = bias.reshape(B, 1, T)
    biasT = bias.reshape(B, T, 1)

    # TODO(synk): embedding-table gather stays a plain XLA take (no win as a Pallas kernel here).
    emb = params["embedding"][text] * math.sqrt(E)             # (B, T, E)

    # CNN branch: Conv1d + ReLU + AdaptiveMaxPool1d(1) (+ dropout == identity)
    cnn_out = conv_relu_maxpool(emb, params["cnn_w2"], params["cnn_b"])

    # Transformer branch
    x = emb + _positional_encoding(T, E)[None]
    for lp in params["layers"]:
        x = encoder_layer(x, lp, bias3, nhead)

    # Bidirectional GRU: split fwd/bwd input projections, batch-major throughout
    x_flat = x.reshape(B * T, E)
    xg_f, xg_b = gru_input_proj(x_flat, params["gru_w_ih_f"], params["gru_b_ih_f"],
                                params["gru_w_ih_b"], params["gru_b_ih_b"])
    xg_f = xg_f.reshape(B, T, 3 * H)
    xg_b = xg_b.reshape(B, T, 3 * H)
    hf, hb = bigru(xg_f, xg_b, params["gru_w_hh_f"], params["gru_w_hh_b"],
                   params["gru_b_hh_f"], params["gru_b_hh_b"], H)       # (B, T, H) each

    # LayerNorm + additive attention pooling (masked softmax over time), fused
    ctx = norm_attn_pool(hf, hb, params["gru_norm_g"], params["gru_norm_b"],
                         params["att_wa_w"], params["att_wa_b"], params["att_v_w"], biasT)

    # [cnn | ctx] -> fc1 + relu -> fc2, fused (fc1 split to avoid lane concat)
    return mlp_head(cnn_out, ctx, params["fc1_wc"], params["fc1_wa"],
                    params["fc1_b"], params["fc2_w"], params["fc2_b"])


# -------------------- deterministic parameter init (pre-transposed layouts) --------------------

def init_params(key, cfg):
    V, E = cfg["vocab_size"], cfg["embedding_dim"]
    H, F_, K = cfg["gru_units"], cfg["cnn_filters"], cfg["cnn_kernel_size"]
    dense, FF = cfg["dense_hidden_units"], cfg["dim_feedforward"]
    nlayers = cfg["num_encoder_layers"]
    keys = iter(jax.random.split(key, 256))

    def w(shape, scale=0.05):
        return scale * jax.random.normal(next(keys), shape, jnp.float32)

    def row(v):
        return v.reshape(1, -1)

    emb = w((V, E), 1.0).at[0].set(0.0)              # padding_idx=0 row is zero
    layers = []
    for _ in range(nlayers):
        layers.append(dict(
            in_w=w((3 * E, E)).T, in_b=row(w((3 * E,))),          # (E, 3E)
            out_w=w((E, E)).T, out_b=row(w((E,))),                # (E, E)
            ff1_w=w((FF, E)).T, ff1_b=row(w((FF,))),              # (E, FF)
            ff2_w=w((E, FF)).T, ff2_b=row(w((E,))),               # (FF, E)
            ln1_g=row(jnp.ones((E,), jnp.float32)), ln1_b=row(jnp.zeros((E,), jnp.float32)),
            ln2_g=row(jnp.ones((E,), jnp.float32)), ln2_b=row(jnp.zeros((E,), jnp.float32)),
        ))

    cnn_w = w((F_, E, K))                                          # PyTorch Conv1d layout
    w_ih_f, w_ih_b = w((3 * H, E)), w((3 * H, E))
    w_hh_f, w_hh_b = w((3 * H, H)), w((3 * H, H))
    b_ih_f, b_ih_b = w((3 * H,)), w((3 * H,))
    b_hh_f, b_hh_b = w((3 * H,)), w((3 * H,))

    fc1_full = w((dense, F_ + 2 * H)).T                            # (F+2H, dense)

    return dict(
        embedding=emb,
        layers=layers,
        cnn_w2=jnp.transpose(cnn_w, (2, 1, 0)).reshape(K * E, F_),  # im2col weight (K*E, F)
        cnn_b=row(w((F_,))),
        gru_w_ih_f=w_ih_f.T, gru_w_ih_b=w_ih_b.T,                   # (E, 3H) each
        gru_b_ih_f=row(b_ih_f), gru_b_ih_b=row(b_ih_b),
        gru_w_hh_f=w_hh_f.T, gru_w_hh_b=w_hh_b.T,                   # (H, 3H) each
        gru_b_hh_f=row(b_hh_f), gru_b_hh_b=row(b_hh_b),
        gru_norm_g=row(jnp.ones((2 * H,), jnp.float32)),
        gru_norm_b=row(jnp.zeros((2 * H,), jnp.float32)),
        att_wa_w=w((2 * H, 2 * H)).T, att_wa_b=row(w((2 * H,))),
        att_v_w=w((1, 2 * H)).T,                                    # (2H, 1)
        fc1_wc=fc1_full[:F_], fc1_wa=fc1_full[F_:],                 # split fc1 weight
        fc1_b=row(w((dense,))),
        fc2_w=w((1, dense)).T, fc2_b=row(w((1,))),
    )


if __name__ == "__main__":
    cfg = dict(vocab_size=50, embedding_dim=32, gru_units=16, cnn_filters=8,
               cnn_kernel_size=3, dense_hidden_units=32, nhead=4,
               num_encoder_layers=2, dim_feedforward=64,
               engineered_features_dim=0)
    key = jax.random.PRNGKey(0)
    pkey, dkey = jax.random.split(key)
    params = init_params(pkey, cfg)

    # text_input: (B=2, T=8) int32, with padding tokens (0) to exercise the mask
    text = jax.random.randint(dkey, (2, 8), 1, cfg["vocab_size"], dtype=jnp.int32)
    text = text.at[1, -2:].set(0)

    out = forward(text, params, cfg)
    out = jax.block_until_ready(out)
    assert out.shape == (2, 1)
    assert bool(jnp.all(jnp.isfinite(out)))
    print("KERNEL_OK")
</pallas_src>

<mosaic_0001>
module attributes {stable_mosaic.version = 11 : i64} {
  func.func @_conv_pool_kernel(%arg0: i32, %arg1: memref<1x8x32xf32, #tpu.memory_space<vmem>>, %arg2: memref<96x8xf32, #tpu.memory_space<vmem>>, %arg3: memref<1x8xf32, #tpu.memory_space<vmem>>, %arg4: memref<1x1x8xf32, #tpu.memory_space<vmem>>) attributes {dimension_semantics = [#tpu.dimension_semantics<parallel>], iteration_bounds = array<i64: 2>, scalar_prefetch = 0 : i64, scratch_operands = 0 : i64, tpu.core_type = #tpu.core_type<tc>, window_params = [{transform_indices = @transform_0, window_bounds = array<i64: 1, 8, 32>}, {pipeline_mode = #tpu.pipeline_mode<synchronous>, transform_indices = @transform_1, window_bounds = array<i64: 96, 8>}, {pipeline_mode = #tpu.pipeline_mode<synchronous>, transform_indices = @transform_2, window_bounds = array<i64: 1, 8>}, {transform_indices = @transform_3, window_bounds = array<i64: 1, 1, 8>}]} {
    %c0 = arith.constant 0 : index
    %c0_0 = arith.constant 0 : index
    %c0_1 = arith.constant 0 : index
    %0 = vector.load %arg1[%c0, %c0_0, %c0_1] : memref<1x8x32xf32, #tpu.memory_space<vmem>>, vector<1x8x32xf32>
    %1 = vector.shape_cast %0 : vector<1x8x32xf32> to vector<8x32xf32>
    %2 = vector.extract_strided_slice %1 {offsets = [0, 0], sizes = [6, 32], strides = [1, 1]} : vector<8x32xf32> to vector<6x32xf32>
    %3 = vector.extract_strided_slice %1 {offsets = [1, 0], sizes = [6, 32], strides = [1, 1]} : vector<8x32xf32> to vector<6x32xf32>
    %4 = vector.extract_strided_slice %1 {offsets = [2, 0], sizes = [6, 32], strides = [1, 1]} : vector<8x32xf32> to vector<6x32xf32>
    %5 = tpu.concatenate %2, %3, %4 in 1 : vector<6x32xf32>, vector<6x32xf32>, vector<6x32xf32> -> vector<6x96xf32>
    %c0_2 = arith.constant 0 : index
    %c0_3 = arith.constant 0 : index
    %6 = vector.load %arg2[%c0_2, %c0_3] : memref<96x8xf32, #tpu.memory_space<vmem>>, vector<96x8xf32>
    %cst = arith.constant dense<0.000000e+00> : vector<6x8xf32>
    %7 = tpu.matmul %5, %6, %cst {dimension_numbers = #tpu.dot_dimension_numbers<[1], [0], [0], [1], [0, 0, 1, 1], [], []>} : vector<6x96xf32>, vector<96x8xf32>, vector<6x8xf32> -> vector<6x8xf32>
    %c0_4 = arith.constant 0 : index
    %c0_5 = arith.constant 0 : index
    %8 = vector.load %arg3[%c0_4, %c0_5] : memref<1x8xf32, #tpu.memory_space<vmem>>, vector<1x8xf32>
    %9 = vector.broadcast %8 : vector<1x8xf32> to vector<6x8xf32>
    %10 = arith.addf %7, %9 : vector<6x8xf32>
    %cst_6 = arith.constant 0.000000e+00 : f32
    %11 = vector.broadcast %cst_6 : f32 to vector<6x8xf32>
    %12 = arith.maximumf %10, %11 : vector<6x8xf32>
    %cst_7 = arith.constant dense<0xFF800000> : vector<8xf32>
    %13 = vector.multi_reduction <maximumf>, %12, %cst_7 [0] : vector<6x8xf32> to vector<8xf32>
    %14 = vector.shape_cast %13 : vector<8xf32> to vector<1x8xf32>
    %c0_8 = arith.constant 0 : index
    %c0_9 = arith.constant 0 : index
    %c0_10 = arith.constant 0 : index
    %15 = vector.load %arg4[%c0_8, %c0_9, %c0_10] : memref<1x1x8xf32, #tpu.memory_space<vmem>>, vector<1x1x8xf32>
    %16 = vector.shape_cast %15 : vector<1x1x8xf32> to vector<1x8xf32>
    %17 = vector.shape_cast %14 : vector<1x8xf32> to vector<1x1x8xf32>
    tpu.vector_store %arg4[%c0_8, %c0_9, %c0_10], %17 {strides = array<i32>} : memref<1x1x8xf32, #tpu.memory_space<vmem>>, vector<1x1x8xf32>,
    return
  }
  func.func @transform_0(%arg0: i32) -> (i32, i32, i32) {
    %c0_i32 = arith.constant 0 : i32
    %c0_i32_0 = arith.constant 0 : i32
    %c0_i32_1 = arith.constant 0 : i32
    return %arg0, %c0_i32, %c0_i32_0 : i32, i32, i32
  }
  func.func @transform_1(%arg0: i32) -> (i32, i32) {
    %c0_i32 = arith.constant 0 : i32
    %c0_i32_0 = arith.constant 0 : i32
    %c0_i32_1 = arith.constant 0 : i32
    return %c0_i32, %c0_i32_0 : i32, i32
  }
  func.func @transform_2(%arg0: i32) -> (i32, i32) {
    %c0_i32 = arith.constant 0 : i32
    %c0_i32_0 = arith.constant 0 : i32
    %c0_i32_1 = arith.constant 0 : i32
    return %c0_i32, %c0_i32_0 : i32, i32
  }
  func.func @transform_3(%arg0: i32) -> (i32, i32, i32) {
    %c0_i32 = arith.constant 0 : i32
    %c0_i32_0 = arith.constant 0 : i32
    %c0_i32_1 = arith.constant 0 : i32
    return %arg0, %c0_i32, %c0_i32_0 : i32, i32, i32
  }
}

</mosaic_0001>

<bundles_post_ra>
// kernel: tpu_custom_call.1
= control target key start
LH: loop header
LB: loop body
LE: loop exit
PB: predicated region body
PF: predicated region fallthrough
CT: control target
= control target key end

     0   :  { %8 = vsyncpa [#allocation3], 0  ;;  %s558_s0 = inlined_call_operand.vmem [shape: f32[2,8,32], index: 0, kind: input, shape index: {}]   ;;  %s559_s1 = inlined_call_operand.vmem [shape: f32[96,8], index: 1, kind: input, shape index: {}]   ;;  %s560_s2 = inlined_call_operand.vmem [shape: f32[1,8], index: 2, kind: input, shape index: {}]   ;;  %s561_s3 = inlined_call_operand.hbm [shape: f32[2,1,8], index: 3, kind: output, shape index: {}]  }
   0x1   :  { %10 = vsyncpa [#allocation3 + $0x1], 0  ;;  %s434_s12 = smov 0   ;;  %s436_s13 = smov 0  }
   0x2   :  { %s438_s14 = smov 0   ;;  %s440_s15 = smov 0  }
   0x3 LB: > { %s455_s16 = sadd.s32 4294967295, %s410_s15   ;;  %s298_s17 = sadd.s32 4294967294, %s410_s15   ;;  %s410_s15 = sphi %s440_s15, %s567_s15   ;;  %s406_s14 = sphi %s438_s14, %s566_s14   ;;  %s402_s13 = sphi %s436_s13, %s565_s13   ;;  %s398_s12 = sphi %s434_s12, %s564_s12  }
   0x4   : > { %s459_s18 = sadd.s32 1, %s410_s15   ;;  %s91_s19 = sadd.s32 1, %s406_s14 }
   0x5   : > { %s88_s20 = ssub.s32 %s410_s15, %s459_s18  ;;  %p101_p0 = scmp.ne.s32.totalorder %s406_s14, %s402_s13 }
   0x6   : > { %p89_p1 = scmp.eq.s32.totalorder %s88_s20, 0  ;;  %p102_p2 = scmp.eq.s32.totalorder %s455_s16, 1 }
   0x7   : > { %p107_p3 = scmp.ne.s32.totalorder %s402_s13, %s398_s12  ;;  %p108_p4 = scmp.eq.s32.totalorder %s298_s17, 1 }
   0x8   : > { %s470_s21 = scalar_select %p89_p1, %s406_s14, %s91_s19  }
   0x9   : > { %p472_p5 = por %p102_p2, %p101_p0  ;;  %p476_p6 = por %p108_p4, %p107_p3 }
   0xa   : > { %p301_p7 = scmp.ge.s32.totalorder %s410_s15, 1  ;;  %p139_p8 = scmp.lt.s32.totalorder %s410_s15, 3 }
   0xc   : > { %p140_p9 = pnand %p301_p7, %p139_p8 }
   0xd   : > { %p161_p10 = scmp.lt.s32.totalorder (!%p140_p9), %s455_s16, 1  ;;  %s412_s20 = smov (!%p140_p9), 32  }
   0xe   : > { %143 = sbr.rel (%p140_p9) target bundleno = 296 (0x128), region = 32  ;;  %s413_s26 = smov (!%p140_p9), 64  }
   0xf   : > { %s159_s17 = sand.u32 (!%p140_p9), 1, %s402_s13   ;;  %s239_s24 = scalar_lea.hbm (!%p140_p9), %s561_s3, %s455_s16 }
  0x10   : > { %s160_s25 = scalar_lea.vmem (!%p140_p9), [#allocation2], %s159_s17  ;;  %s243_s27 = sshll.u32 (!%p140_p9), %s239_s24, 4  ;;  %s244_s27 = int_to_ptr.hbm [resolvable:$true] %s243_s27 }
  0x11   : > { %s362_s29 = sshra.s32 (!%p140_p9), %s244_s27, 4  ;;  %s368_s5 = scalar_lea.hbm (!%p140_p9), %s561_s3, 2  ;;  %s363_s29 = int_to_ptr.hbm [resolvable:$true] %s362_s29 }
  0x12   : > { %s364_s30 = scalar_lea.hbm (!%p140_p9), %s363_s29, 1  ;;  %p369_p0 = scmp.lt.s32.totalorder (!%p140_p9), %s363_s29, %s561_s3 }
  0x13   : > { %v190_v0 = vld [vmem:[%s559_s1 + $0x58] sm:$0xff]  ;;  %v189_v1 = vld [vmem:[%s559_s1 + $0x50] sm:$0xff]  ;;  %s162_s28 = scalar_select %p161_p10, %s455_s16, 1  ;;  %v188_v2 = vld [vmem:[%s559_s1 + $0x48] sm:$0xff]  ;;  %vm175_vm0 = vcmask 261120   ;;  %vm177_vm1 = vcmask 523264  }
  0x14   : > { %203 = vmatpush.msra.mxu0 %v190_v0  ;;  %v187_v3 = vld [vmem:[%s559_s1 + $0x40] sm:$0xff]  ;;  %v186_v5 = vld [vmem:[%s559_s1 + $0x38] sm:$0xff]  ;;  %v185_v7 = vld [vmem:[%s559_s1 + $0x30] sm:$0xff]  ;;  %vm195_vm2 = vcmask 785408   ;;  %vm220_vm3 = vcmask 62464   ;;  %vm228_vm4 = vcmask 57344   ;;  %p365_p11 = scmp.ne.s32.totalorder %s363_s29, %s364_s30  ;;  %p370_p1 = scmp.lt.s32.totalorder %s368_s5, %s364_s30 }
  0x15   : > { %s302_s4 = sshll.u32 %s162_s28, 3  ;;  %v184_v8 = vld [vmem:[%s559_s1 + $0x28] sm:$0xff]  ;;  %v183_v10 = vld [vmem:[%s559_s1 + $0x20] sm:$0xff]  ;;  %v182_v11 = vld [vmem:[%s559_s1 + $0x18] sm:$0xff]  ;;  %s231_s28 = scalar_lea.sflag [#allocation3], %s159_s17 }
  0x16   : > { %204 = vmatpush.msra.mxu0 %v189_v1  ;;  %s164_s9 = scalar_lea.vmem %s558_s0, %s302_s4  ;;  %v181_v12 = vld [vmem:[%s559_s1 + $0x10] sm:$0xff]  ;;  %v180_v13 = vld [vmem:[%s559_s1 + $0x8] sm:$0xff]  ;;  %v179_v14 = vld [vmem:[%s559_s1] sm:$0xff]  ;;  %p366_p12 = pnand %p365_p11, %p472_p5 }
  0x17   : > { %v165_v4 = vld [vmem:[%s164_s9] sm:$0xff]  ;;  %p371_p2 = por %p370_p1, %p369_p0 }
  0x18   : > { %205 = vmatpush.msra.mxu0 %v188_v2  ;;  %v167_v6 = vrot.slane %v165_v4, 1  ;;  %v171_v9 = vrot.slane %v165_v4, 2  ;;  %v347_v19 = vld [vmem:[%s560_s2] ss:$0 sm:$0xff]  ;;  %p367_p13 = pneg %p366_p12 }
  0x1a   : > { %206 = vmatpush.msra.mxu0 %v187_v3  ;;  %168 = vrot.lane.b32.xlu0 %v167_v6, %s412_s20  ;;  %p372_p3 = pnand %p371_p2, %p367_p13 }
  0x1c   : > { %207 = vmatpush.msra.mxu0 %v186_v5 }
  0x1e   : > { %208 = vmatpush.msra.mxu0 %v185_v7 }
  0x20   : > { %209 = vmatpush.msra.mxu0 %v184_v8 }
  0x22   : > { %172 = vrot.lane.b32.xlu0 %v171_v9, %s413_s26  ;;  %210 = vmatpush.msra.mxu0 %v183_v10  ;;  %s241_s26 = sshll.u32 %s160_s25, 4  ;;  %s242_s26 = int_to_ptr.vmem [resolvable:$true] %s241_s26 }
  0x24   : > { %211 = vmatpush.msra.mxu0 %v182_v11 }
  0x26   : > { %212 = vmatpush.msra.mxu0 %v181_v12 }
  0x28   : > { %213 = vmatpush.msra.mxu0 %v180_v13 }
  0x2a   : > { %214 = vmatpush.msra.mxu0 %v179_v14 }
  0x8c   : > { %v169_v15 = vpop.permute.xlu0 %168 }
  0x8d   : > { %v176_v16 = vsel %vm175_vm0, %v165_v4, %v169_v15 }
  0x94   : > { %v173_v17 = vpop.permute.xlu0 %172 }
  0x95   : > { %v178_v18 = vsel %vm177_vm1, %v176_v16, %v173_v17 }
  0x96   : > { %303 = vmatmul.msk.f32.vlgmr.msra.gmra.mxu0 %vm195_vm2, %v178_v18 }
 0x113   : > { %v216_v20 = vpop.f32.mrf.mxu0 }
 0x114   : > { %v217_v21 = vadd.f32 %v347_v19, %v216_v20 }
 0x116   : > { %v219_v22 = vmax.f32 %v217_v21, 0.0 }
 0x118   : > { %v221_v23 = vsel %vm220_vm3, %v219_v22, -inf }
 0x119   : > { %v222_v24 = vrot.slane %v221_v23, 4 }
 0x11b   : > { %v223_v25 = vmax.f32 %v221_v23, %v222_v24 }
 0x11d   : > { %v224_v26 = vrot.slane %v223_v25, 2 }
 0x11f   : > { %v225_v27 = vmax.f32 %v223_v25, %v224_v26 }
 0x121   : > { %v226_v28 = vrot.slane %v225_v27, 1 }
 0x123   : > { %v227_v29 = vmax.f32 %v225_v27, %v226_v28 }
 0x125   : > { %229 = vst.msk [vmem:[%s160_s25] sm:$0x1] %vm228_vm4, %v227_v29 }
 0x126   : > { %375 = shalt.err (!%p372_p3)
}
 0x127   : > { %306 = dma.vmem_to_hbm [thread:$0]  (%p472_p5), %s242_s26, 16, %s244_s27, %s231_s28  }
 0x128 PF: > { %p312_p4 = scmp.ge.s32.totalorder %s410_s15, 2  ;;  %s255_s8 = sand.u32 1, %s398_s12  }
 0x129   : > { %s256_s9 = scalar_lea.sflag [#allocation3], %s255_s8 }
 0x12a   : > { %p309_p7 = pnand %p312_p4, %p476_p6 }
 0x12c   : > { %p310_p8 = pneg %p309_p7 }
 0x12e   : > { %393 = dma.done.wait (%p310_p8), %s256_s9, 16  }
 0x12f   : > { %395 = vsyncadd (%p310_p8), %s256_s9, 4294967280  ;;  %p13_p9 = scmp.ge.s32.totalorder %s459_s18, 4   ;;  %s564_s12 = smov %s402_s13 }
 0x130   : > { %s565_s13 = smov %s406_s14  ;;  %s566_s14 = smov %s470_s21 }
 0x131   : > { %s567_s15 = smov %s459_s18  ;;  %15 = sbr.rel (!%p13_p9) target bundleno = 3 (0x3), region = 67 }
 0x136   :  { %261 = vsyncpa [#allocation3], 1 }
 0x137   :  { %263 = vsyncpa [#allocation3 + $0x1], 1 }

</bundles_post_ra>
